<compile_context>
chip_gen: v6e
topology: v6e:2x2x1
jax: 0.10.0
libtpu: 0.0.40
codegen_flags: <defaults>
</compile_context>

<pallas_src>
import functools

import jax
import jax.numpy as jnp
from jax.experimental import pallas as pl
from jax.experimental.pallas import tpu as pltpu


def _round_up(x, m):
    return (x + m - 1) // m * m


def _encoder_kernel(x_ref, w_ref, y_ref, norm_ref, *, eps, n):
    """One (TM, L) row-tile of the encoder.

    x_ref:    (TM, L)   input rows (mixture frames)
    w_ref:    (L, 2N)   fused [Wu | Wv] weights, resident across the grid
    y_ref:    (TM, N)   relu(xn @ Wu) * sigmoid(xn @ Wv)
    norm_ref: (TM, 1)   per-row L2 norm of x
    """
    x = x_ref[...].astype(jnp.float32)

    # L2 norm over the lane (L) axis; keep norm math in f32 on all chips
    # (v5e has no bf16 VPU/EUP).
    norm = jnp.sqrt(jnp.sum(x * x, axis=-1, keepdims=True))
    # Exact reciprocal on the EUP path instead of a VALU divide.
    inv = pl.reciprocal(norm + eps, approx=False)
    xn = x * inv

    # Single fused MXU matmul against [Wu | Wv]: lane-dense (TM, 2N) result,
    # half the MXU pushes/pops vs two separate dots, LHS reused once.
    # Operands follow the weight dtype (bf16 weights -> bf16 MXU inputs),
    # accumulation stays f32.
    w = w_ref[...]
    z = jnp.dot(xn.astype(w.dtype), w, preferred_element_type=jnp.float32)

    hidden = jnp.maximum(z[:, :n], 0.0)
    gate = jax.nn.sigmoid(z[:, n:])

    y_ref[...] = (hidden * gate).astype(y_ref.dtype)
    # TODO(synk): (TM, 1) norm output uses masked stores; it is tiny, accepted.
    norm_ref[...] = norm.astype(norm_ref.dtype)


def prepare_encoder_weights(w_u, w_v):
    """Fuse PyTorch-layout weights (signal_size, length) into one (L, 2N) slab.

    Call ONCE at parameter-load time (not per forward call) so no transpose /
    concatenate re-materializes in HBM on the hot path.
    """
    return jnp.concatenate([w_u, w_v], axis=0).T  # (L, 2N)


def encoder_forward(mixture, w_fused, eps, *, tm=512):
    """mixture: (B, K, L); w_fused: (L, 2*signal_size) from prepare_encoder_weights.

    Returns (y, norm_coef): y (B, K, N), norm_coef (B, K, 1), matching
    Encoder.forward for both e_type='fc' and e_type='conv'.
    """
    B, K, L = mixture.shape
    two_n = w_fused.shape[1]
    n = two_n // 2
    M = B * K

    # Row-tile size: multiple of 8 sublanes; large enough to reach the HBM
    # roofline, small enough that the double-buffered pipeline also fits
    # v7x's smaller (64 MiB physical / 32 MiB scoped) VMEM.
    tm = min(tm, _round_up(M, 8))
    m_pad = _round_up(M, tm)

    x2d = mixture.reshape(M, L)
    if m_pad != M:
        # Zero rows are harmless: norm=0 -> xn=0 -> y=0; sliced off below.
        x2d = jnp.pad(x2d, ((0, m_pad - M), (0, 0)))

    grid = (m_pad // tm,)

    # Rough VMEM budget: double-buffered row tiles + resident fused weights,
    # with 4x headroom, clipped to a range safe on v5e/v6e/v7x.
    block_bytes = tm * (L + n + 1) * 4
    weight_bytes = L * two_n * w_fused.dtype.itemsize
    vmem_limit = int(
        min(32 << 20, max(16 << 20, 4 * (2 * block_bytes + 2 * weight_bytes))))

    cost = pl.CostEstimate(
        flops=4 * M * L * n + 5 * M * n,
        transcendentals=M * n + 2 * M,
        bytes_accessed=(M * L + M * n + M) * mixture.dtype.itemsize
        + L * two_n * w_fused.dtype.itemsize,
    )

    kernel = functools.partial(_encoder_kernel, eps=eps, n=n)

    y2d, norm2d = pl.pallas_call(
        kernel,
        out_shape=(
            jax.ShapeDtypeStruct((m_pad, n), mixture.dtype),
            jax.ShapeDtypeStruct((m_pad, 1), jnp.float32),
        ),
        grid=grid,
        in_specs=[
            pl.BlockSpec((tm, L), lambda i: (i, 0)),      # row tile (pipelined)
            pl.BlockSpec((L, two_n), lambda i: (0, 0)),   # weights resident
        ],
        out_specs=(
            pl.BlockSpec((tm, n), lambda i: (i, 0)),
            pl.BlockSpec((tm, 1), lambda i: (i, 0)),
        ),
        compiler_params=pltpu.CompilerParams(
            dimension_semantics=("parallel",),
            vmem_limit_bytes=vmem_limit,
        ),
        cost_estimate=cost,
    )(x2d, w_fused)

    y = y2d[:M].reshape(B, K, n)
    norm_coef = norm2d[:M].reshape(B, K, 1)
    return y, norm_coef


def encoder_reference(mixture, w_u, w_v, eps):
    """Pure-JAX reference mirroring the PyTorch forward (fc path)."""
    norm_coef = jnp.linalg.norm(mixture, axis=2, keepdims=True)
    xn = mixture / (norm_coef + eps)
    hidden = jax.nn.relu(jnp.einsum("bkl,nl->bkn", xn, w_u))
    gate = jax.nn.sigmoid(jnp.einsum("bkl,nl->bkn", xn, w_v))
    return hidden * gate, norm_coef


if __name__ == "__main__":
    EPS = 1e-8
    key = jax.random.PRNGKey(0)
    k_x, k_u, k_v, k_x2 = jax.random.split(key, 4)

    # --- small shapes consistent with the module: length=L, signal_size=N ---
    B, K, L, N = 2, 8, 32, 64
    mixture = jax.random.normal(k_x, (B, K, L), dtype=jnp.float32)
    # PyTorch Linear / Conv1d(k=1) weight layout: (signal_size, length)
    w_u = jax.random.normal(k_u, (N, L), dtype=jnp.float32) * 0.1
    w_v = jax.random.normal(k_v, (N, L), dtype=jnp.float32) * 0.1
    w_fused = prepare_encoder_weights(w_u, w_v)  # once, at load time

    y, norm_coef = encoder_forward(mixture, w_fused, EPS)
    y = jax.block_until_ready(y)
    norm_coef = jax.block_until_ready(norm_coef)

    y_ref, norm_ref = encoder_reference(mixture, w_u, w_v, EPS)
    assert y.shape == (B, K, N) and norm_coef.shape == (B, K, 1)
    assert jnp.allclose(y, y_ref, atol=1e-5, rtol=1e-5)
    assert jnp.allclose(norm_coef, norm_ref, atol=1e-5, rtol=1e-5)

    # --- exercise the multi-tile grid + row-padding path ---
    B2, K2 = 3, 50  # M = 150 -> tm=64 -> grid=(3,), 42 padded rows
    mixture2 = jax.random.normal(k_x2, (B2, K2, L), dtype=jnp.float32)
    y2, norm2 = encoder_forward(mixture2, w_fused, EPS, tm=64)
    y2 = jax.block_until_ready(y2)
    norm2 = jax.block_until_ready(norm2)

    y2_ref, norm2_ref = encoder_reference(mixture2, w_u, w_v, EPS)
    assert y2.shape == (B2, K2, N) and norm2.shape == (B2, K2, 1)
    assert jnp.allclose(y2, y2_ref, atol=1e-5, rtol=1e-5)
    assert jnp.allclose(norm2, norm2_ref, atol=1e-5, rtol=1e-5)

    print("KERNEL_OK")
</pallas_src>

<mosaic_0001>
module attributes {stable_mosaic.version = 11 : i64} {
  func.func @_encoder_kernel(%arg0: i32, %arg1: memref<16x32xf32, #tpu.memory_space<vmem>>, %arg2: memref<32x128xf32, #tpu.memory_space<vmem>>, %arg3: memref<16x64xf32, #tpu.memory_space<vmem>>, %arg4: memref<16x1xf32, #tpu.memory_space<vmem>>) attributes {dimension_semantics = [#tpu.dimension_semantics<parallel>], iteration_bounds = array<i64: 1>, scalar_prefetch = 0 : i64, scratch_operands = 0 : i64, tpu.core_type = #tpu.core_type<tc>, window_params = [{transform_indices = @transform_0, window_bounds = array<i64: 16, 32>}, {pipeline_mode = #tpu.pipeline_mode<synchronous>, transform_indices = @transform_1, window_bounds = array<i64: 32, 128>}, {transform_indices = @transform_2, window_bounds = array<i64: 16, 64>}, {transform_indices = @transform_3, window_bounds = array<i64: 16, 1>}]} {
    %c0 = arith.constant 0 : index
    %c0_0 = arith.constant 0 : index
    %0 = vector.load %arg1[%c0, %c0_0] : memref<16x32xf32, #tpu.memory_space<vmem>>, vector<16x32xf32>
    %1 = arith.mulf %0, %0 : vector<16x32xf32>
    %cst = arith.constant dense<0.000000e+00> : vector<16xf32>
    %2 = vector.multi_reduction <add>, %1, %cst [1] : vector<16x32xf32> to vector<16xf32>
    %3 = vector.shape_cast %2 : vector<16xf32> to vector<16x1xf32>
    %4 = math.sqrt %3 : vector<16x1xf32>
    %cst_1 = arith.constant 9.99999993E-9 : f32
    %5 = vector.broadcast %cst_1 : f32 to vector<16x1xf32>
    %6 = arith.addf %4, %5 : vector<16x1xf32>
    %7 = tpu.reciprocal %6 : vector<16x1xf32> -> vector<16x1xf32>
    %8 = vector.broadcast %7 : vector<16x1xf32> to vector<16x32xf32>
    %9 = arith.mulf %0, %8 : vector<16x32xf32>
    %c0_2 = arith.constant 0 : index
    %c0_3 = arith.constant 0 : index
    %10 = vector.load %arg2[%c0_2, %c0_3] : memref<32x128xf32, #tpu.memory_space<vmem>>, vector<32x128xf32>
    %cst_4 = arith.constant dense<0.000000e+00> : vector<16x128xf32>
    %11 = tpu.matmul %9, %10, %cst_4 {dimension_numbers = #tpu.dot_dimension_numbers<[1], [0], [0], [1], [0, 0, 1, 1], [], []>} : vector<16x32xf32>, vector<32x128xf32>, vector<16x128xf32> -> vector<16x128xf32>
    %12 = vector.extract_strided_slice %11 {offsets = [0, 0], sizes = [16, 64], strides = [1, 1]} : vector<16x128xf32> to vector<16x64xf32>
    %cst_5 = arith.constant 0.000000e+00 : f32
    %13 = vector.broadcast %cst_5 : f32 to vector<16x64xf32>
    %14 = arith.maximumf %12, %13 : vector<16x64xf32>
    %15 = vector.extract_strided_slice %11 {offsets = [0, 64], sizes = [16, 64], strides = [1, 1]} : vector<16x128xf32> to vector<16x64xf32>
    %16 = arith.negf %15 : vector<16x64xf32>
    %17 = math.exp %16 : vector<16x64xf32>
    %cst_6 = arith.constant 1.000000e+00 : f32
    %18 = vector.broadcast %cst_6 : f32 to vector<16x64xf32>
    %19 = arith.addf %18, %17 : vector<16x64xf32>
    %20 = arith.divf %18, %19 : vector<16x64xf32>
    %21 = arith.mulf %14, %20 : vector<16x64xf32>
    %c0_7 = arith.constant 0 : index
    %c0_8 = arith.constant 0 : index
    %22 = vector.load %arg3[%c0_7, %c0_8] : memref<16x64xf32, #tpu.memory_space<vmem>>, vector<16x64xf32>
    tpu.vector_store %arg3[%c0_7, %c0_8], %21 {strides = array<i32>} : memref<16x64xf32, #tpu.memory_space<vmem>>, vector<16x64xf32>,
    %c0_9 = arith.constant 0 : index
    %c0_10 = arith.constant 0 : index
    %23 = vector.load %arg4[%c0_9, %c0_10] : memref<16x1xf32, #tpu.memory_space<vmem>>, vector<16x1xf32>
    tpu.vector_store %arg4[%c0_9, %c0_10], %4 {strides = array<i32>} : memref<16x1xf32, #tpu.memory_space<vmem>>, vector<16x1xf32>,
    return
  }
  func.func @transform_0(%arg0: i32) -> (i32, i32) {
    %c0_i32 = arith.constant 0 : i32
    %c0_i32_0 = arith.constant 0 : i32
    return %arg0, %c0_i32 : i32, i32
  }
  func.func @transform_1(%arg0: i32) -> (i32, i32) {
    %c0_i32 = arith.constant 0 : i32
    %c0_i32_0 = arith.constant 0 : i32
    %c0_i32_1 = arith.constant 0 : i32
    return %c0_i32, %c0_i32_0 : i32, i32
  }
  func.func @transform_2(%arg0: i32) -> (i32, i32) {
    %c0_i32 = arith.constant 0 : i32
    %c0_i32_0 = arith.constant 0 : i32
    return %arg0, %c0_i32 : i32, i32
  }
  func.func @transform_3(%arg0: i32) -> (i32, i32) {
    %c0_i32 = arith.constant 0 : i32
    %c0_i32_0 = arith.constant 0 : i32
    return %arg0, %c0_i32 : i32, i32
  }
}

</mosaic_0001>

<bundles_post_ra>
// kernel: tpu_custom_call.1
= control target key start
LH: loop header
LB: loop body
LE: loop exit
PB: predicated region body
PF: predicated region fallthrough
CT: control target
= control target key end

     0   :  { %9 = vsyncpa [#allocation3], 0  ;;  %s373_s0 = inlined_call_operand.hbm [shape: f32[16,32], index: 0, kind: input, shape index: {}]   ;;  %s374_s1 = inlined_call_operand.hbm [shape: f32[32,128], index: 1, kind: input, shape index: {}]   ;;  %s375_s2 = inlined_call_operand.hbm [shape: f32[16,64], index: 2, kind: output, shape index: {0}]   ;;  %s376_s3 = inlined_call_operand.vmem [shape: f32[16,1], index: 3, kind: output, shape index: {1}]  }
   0x1   :  { %10 = vsyncpa [#allocation6], 0 }
   0x2   :  { %11 = vsyncpa [#allocation4], 0  ;;  %s319_s12 = smov [#allocation2]  }
   0x3   :  { %s17_s13 = sshll.u32 %s319_s12, 4  ;;  %s18_s13 = int_to_ptr.vmem [resolvable:$true] %s17_s13 }
   0x4   :  { %s261_s14 = scalar_lea.vmem %s18_s13, 256  ;;  %p266_p1 = scmp.lt.s32.totalorder %s18_s13, %s18_s13 }
   0x5   :  { %p262_p0 = scmp.ne.s32.totalorder %s18_s13, %s261_s14  ;;  %p267_p2 = scmp.lt.s32.totalorder %s261_s14, %s261_s14 }
   0x7   :  { %p268_p3 = por %p267_p2, %p266_p1 }
   0x9   :  { %p269_p4 = pnand %p268_p3, %p262_p0 }
   0xb   :  { %272 = shalt.err (!%p269_p4)
}
   0xc   :  { %s320_s15 = smov 128   ;;  %s321_s16 = smov 8  }
   0xd   :  { %23 = dma.hbm_to_vmem [thread:$0]  %s373_s0, 256, %s18_s13, [#allocation3], %s320_s15, %s320_s15, %s321_s16  }
   0xe   :  { %s322_s19 = smov [#allocation5]  }
   0xf   :  { %s29_s20 = sshll.u32 %s322_s19, 4  ;;  %s30_s20 = int_to_ptr.vmem [resolvable:$true] %s29_s20 }
  0x10   :  { %s281_s21 = scalar_lea.vmem %s30_s20, 512  ;;  %p286_p6 = scmp.lt.s32.totalorder %s30_s20, %s30_s20 }
  0x11   :  { %p282_p5 = scmp.ne.s32.totalorder %s30_s20, %s281_s21  ;;  %p287_p7 = scmp.lt.s32.totalorder %s281_s21, %s281_s21 }
  0x13   :  { %p288_p8 = por %p287_p7, %p286_p6 }
  0x15   :  { %p289_p9 = pnand %p288_p8, %p282_p5 }
  0x17   :  { %292 = shalt.err (!%p289_p9)
}
  0x18   :  { %35 = dma.hbm_to_vmem [thread:$0]  %s374_s1, 512, %s30_s20, [#allocation6], %s320_s15, %s320_s15, %s321_s16  }
  0x19   :  { %313 = dma.done.wait [#allocation3], 256  }
  0x1a   :  { %314 = vsyncadd [#allocation3], 4294967040 }
  0x1b   :  { %315 = dma.done.wait [#allocation6], 512  }
  0x1c   :  { %316 = vsyncadd [#allocation6], 4294966784  ;;  %v42_v0 = vld [vmem:[#allocation2] sm:$0xff]  ;;  %vm46_vm0 = vcmask 261120   ;;  %v43_v1 = vld [vmem:[#allocation2 + $0x8] sm:$0xff]  ;;  %vm185_vm2 = vcmask 7168  }
  0x1d   :  { %v44_v2 = vmul.f32 %v42_v0, %v42_v0  ;;  %v45_v3 = vmul.f32 %v43_v1, %v43_v1  ;;  %v76_v6 = vld [vmem:[#allocation5 + $0x18] sm:$0xff]  ;;  %v75_v7 = vld [vmem:[#allocation5 + $0x10] sm:$0xff]  ;;  %v74_v8 = vld [vmem:[#allocation5 + $0x8] sm:$0xff]  ;;  %vm182_vm6 = vcmask 523264   ;;  %s324_s26 = smov [#allocation7]  }
  0x1e   :  { %220 = vmatprep.subr.mxu0 %v76_v6  ;;  %v73_v9 = vld [vmem:[#allocation5] sm:$0xff]  ;;  %s193_s27 = sshll.u32 %s324_s26, 4  ;;  %s194_s27 = int_to_ptr.vmem [resolvable:$true] %s193_s27 }
  0x1f   :  { %v47_v4 = vsel %vm46_vm0, %v44_v2, 0.0  ;;  %v50_v5 = vsel %vm46_vm0, %v45_v3, 0.0  ;;  %221 = vmatpush3.msra.mxu0 %v76_v6  ;;  %s293_s28 = scalar_lea.vmem %s194_s27, 256  ;;  %p298_p11 = scmp.lt.s32.totalorder %s194_s27, %s194_s27 }
  0x20   :  { %48 = vadd.xlane.f32.xlu0 %v47_v4  ;;  %222 = vmatprep.subr.mxu0 %v75_v7  ;;  %p294_p10 = scmp.ne.s32.totalorder %s194_s27, %s293_s28  ;;  %p299_p12 = scmp.lt.s32.totalorder %s293_s28, %s293_s28 }
  0x21   :  { %223 = vmatpush3.msra.mxu0 %v75_v7 }
  0x22   :  { %224 = vmatprep.subr.mxu0 %v74_v8  ;;  %p300_p13 = por %p299_p12, %p298_p11 }
  0x23   :  { %225 = vmatpush3.msra.mxu0 %v74_v8 }
  0x24   :  { %51 = vadd.xlane.f32.xlu0 %v50_v5  ;;  %226 = vmatprep.subr.mxu0 %v73_v9  ;;  %p301_p0 = pnand %p300_p13, %p294_p10 }
  0x25   :  { %227 = vmatpush3.msra.mxu0 %v73_v9 }
  0xa9   :  { %v49_v10 = vpop.xlane.xlu0 %48 }
  0xaa   :  { %237 = vrsqrt.f32 %v49_v10  ;;  %vm55_vm1 = vcmp.eq.f32.partialorder %v49_v10, inf  ;;  %v58_v14 = vand.u32 2147483648, %v49_v10  ;;  %vm57_vm3 = vcmp.eq.f32.partialorder %v49_v10, 0.0 }
  0xad   :  { %v52_v11 = vpop.xlane.xlu0 %51 }
  0xae   :  { %239 = vrsqrt.f32 %v52_v11  ;;  %vm62_vm4 = vcmp.eq.f32.partialorder %v52_v11, inf  ;;  %v65_v20 = vand.u32 2147483648, %v52_v11  ;;  %vm64_vm5 = vcmp.eq.f32.partialorder %v52_v11, 0.0 }
  0xb7   :  { %v238_v12 = vpop.eup %237 }
  0xb8   :  { %v54_v13 = vmul.f32 %v238_v12, %v49_v10 }
  0xba   :  { %v56_v15 = vsel %vm55_vm1, %v49_v10, %v54_v13 }
  0xbb   :  { %v240_v16 = vpop.eup %239  ;;  %v59_v17 = vsel %vm57_vm3, %v58_v14, %v56_v15 }
  0xbc   :  { %v67_v18 = vadd.f32 1e-08, %v59_v17  ;;  %186 = vst.msk [vmem:[%s376_s3] sm:$0xff] %vm185_vm2, %v59_v17  ;;  %v61_v19 = vmul.f32 %v240_v16, %v52_v11 }
  0xbe   :  { %v63_v21 = vsel %vm62_vm4, %v52_v11, %v61_v19  ;;  %241 = vrcp.f32 %v67_v18 }
  0xbf   :  { %v66_v22 = vsel %vm64_vm5, %v65_v20, %v63_v21 }
  0xc0   :  { %v68_v23 = vadd.f32 1e-08, %v66_v22  ;;  %187 = vst.msk [vmem:[%s376_s3 + $0x8] sm:$0xff] %vm185_vm2, %v66_v22  ;;  %s323_s3 = smov 64  }
  0xc2   :  { %243 = vrcp.f32 %v68_v23 }
  0xcb   :  { %v242_v24 = vpop.eup %241 }
  0xcc   :  { %v71_v25 = vmul.f32 %v242_v24, %v42_v0 }
  0xce   :  { %228 = vmatprep.mubr.msk.f32.mxu0 %vm46_vm0, %v71_v25 }
  0xcf   :  { %v244_v26 = vpop.eup %243 }
  0xd0   :  { %v72_v27 = vmul.f32 %v244_v26, %v43_v1 }
  0xd2   :  { %229 = vmatmul.mubr.msk.f32.vlgmr.msra.gmra.mxu0 %vm46_vm0, %v72_v27 }
 0x192   :  { %v230_v28 = vpop.f32.mrf.mxu0 }
 0x193   :  { %v213_v29 = vmul.f32 -1.442695, %v230_v28  ;;  %v159_v41 = vmax.f32 %v230_v28, 0.0 }
 0x194   :  { %v149_v30 = vpop.f32.mrf.mxu0 }
 0x195   :  { %v212_v31 = vmul.f32 -1.442695, %v149_v30  ;;  %245 = vpow2.f32 %v213_v29  ;;  %v158_v38 = vmax.f32 %v149_v30, 0.0 }
 0x197   :  { %247 = vpow2.f32 %v212_v31 }
 0x1a2   :  { %v246_v32 = vpop.eup %245 }
 0x1a3   :  { %v167_v35 = vadd.f32 1.0, %v246_v32 }
 0x1a4   :  { %v248_v33 = vpop.eup %247 }
 0x1a5   :  { %v166_v34 = vadd.f32 1.0, %v248_v33 }
 0x1a7   :  { %249 = vrcp.f32 %v166_v34 }
 0x1a8   :  { %251 = vrcp.f32 %v167_v35 }
 0x1b4   :  { %v250_v36 = vpop.eup %249 }
 0x1b5   :  { %174 = vrot.lane.b32.xlu1 %v250_v36, %s323_s3  ;;  %v252_v37 = vpop.eup %251 }
 0x1b9   :  { %176 = vrot.lane.b32.xlu1 %v252_v37, %s323_s3 }
 0x227   :  { %v175_v39 = vpop.permute.xlu1 %174 }
 0x228   :  { %v180_v40 = vmul.f32 %v175_v39, %v158_v38 }
 0x22a   :  { %183 = vst.msk [vmem:[#allocation7] sm:$0xff] %vm182_vm6, %v180_v40 }
 0x22b   :  { %v177_v42 = vpop.permute.xlu1 %176 }
 0x22c   :  { %v181_v43 = vmul.f32 %v177_v42, %v159_v41 }
 0x22e   :  { %184 = vst.msk [vmem:[#allocation7 + $0x8] sm:$0xff] %vm182_vm6, %v181_v43 }
 0x22f   :  { %304 = shalt.err (!%p301_p0)
}
 0x230   :  { %199 = dma.vmem_to_hbm [thread:$0]  %s194_s27, 256, %s375_s2, [#allocation4], %s320_s15, %s320_s15, %s321_s16  }
 0x231   :  { %317 = dma.done.wait [#allocation4], 256  }
 0x232   :  { %318 = vsyncadd [#allocation4], 4294967040 }
 0x233   :  { %207 = vsyncpa [#allocation3], 1 }
 0x234   :  { %208 = vsyncpa [#allocation6], 1 }
 0x235   :  { %209 = vsyncpa [#allocation4], 1 }

</bundles_post_ra>
